<compile_context>
chip_gen: v6e
topology: v6e:2x2x1
jax: 0.10.0
libtpu: 0.0.40
codegen_flags: <defaults>
</compile_context>

<pallas_src>
import functools

import jax
import jax.numpy as jnp
from jax.experimental import pallas as pl
from jax.experimental.pallas import tpu as pltpu


def _phase_qc(offset, P):
    """Absolute column offset -> (source phase, phase-index shift)."""
    return offset % P, offset // P


# ----------------------------------------------------------------------------
# Fused kernel. All activations are kept phase-decomposed:
#   phase q of a length-L signal = columns q, q+P, q+2P, ...  (P = 2*stride)
# Batch packing: NB samples live side-by-side on the lane axis, each owning a
# contiguous segment of Lp = L/P columns.
# ----------------------------------------------------------------------------
def _temponet_poly_kernel(x_ref, w1_ref, b1_ref, w2_ref, b2_ref, w3_ref,
                          b3_ref, o_ref, *, P, Lp, NB, offs12, offs3):
    NBLp = NB * Lp
    cdtype = x_ref.dtype

    # Within-sample column index of every packed lane (0..Lp-1, repeated NB x).
    seg = jax.lax.broadcasted_iota(jnp.int32, (1, NBLp), 1) % Lp
    mask_cache = {}

    def seg_shift(a, c):
        # a[:, n*Lp + j] -> a[:, n*Lp + j + c], zero when j + c is outside
        # [0, Lp) of the SAME sample.  This is exactly the conv zero-padding
        # and also prevents halo leakage between lane-packed batch samples.
        if c == 0:
            return a
        if abs(c) >= Lp:
            return jnp.zeros_like(a)
        rows = a.shape[0]
        if c > 0:
            sh = jnp.concatenate([a[:, c:], jnp.zeros((rows, c), a.dtype)],
                                 axis=1)
        else:
            sh = jnp.concatenate([jnp.zeros((rows, -c), a.dtype), a[:, :c]],
                                 axis=1)
        if c not in mask_cache:
            ok = (seg < Lp - c) if c > 0 else (seg >= -c)
            mask_cache[c] = ok.astype(a.dtype)
        return sh * mask_cache[c]

    def conv_same(get_phase, w_ref, b_ref):
        # Dilated "same" 3-tap conv over ALL phases as ONE lane-dense matmul:
        # per output phase p, tap offset o reads input phase (p+o) mod P at a
        # small static shift; taps are sublane-concatenated (im2col rows) and
        # the P phase patches are lane-concatenated.
        shift_cache = {}
        cols = []
        for p in range(P):
            taps = []
            for off in offs12:
                q, c = _phase_qc(p + off, P)
                if (q, c) not in shift_cache:
                    shift_cache[(q, c)] = seg_shift(get_phase(q), c)
                taps.append(shift_cache[(q, c)])
            cols.append(jnp.concatenate(taps, axis=0))       # (K*C, NBLp)
        patch = jnp.concatenate(cols, axis=1)                # (K*C, P*NBLp)
        acc = jnp.dot(w_ref[...], patch,
                      preferred_element_type=jnp.float32) + b_ref[...]
        return acc.astype(cdtype)                            # (C', P*NBLp)

    # conv1 on the phase-split input (phases pre-split by the wrapper).
    x_phases = [x_ref[0, q] for q in range(P)]               # each (C_in, NBLp)
    y1 = conv_same(lambda q: x_phases[q], w1_ref, b1_ref)
    # conv2 consumes conv1's phase-major lane blocks (contiguous slices).
    y2 = conv_same(lambda q: y1[:, q * NBLp:(q + 1) * NBLp], w2_ref, b2_ref)

    # conv3 (stride s) + AvgPool(2, 2) fused: pooled[l] depends on y2 columns
    # 2*s*l + (j - pad3), j in [0, K3 + s) -- with P = 2*s this is one tap per
    # (phase, shift), i.e. ONE matmul straight at pooled resolution.
    taps3 = []
    for off in offs3:
        q, c = _phase_qc(off, P)
        taps3.append(seg_shift(y2[:, q * NBLp:(q + 1) * NBLp], c))
    patch3 = jnp.concatenate(taps3, axis=0)                  # ((K3+s)*C1, NBLp)
    out = jnp.dot(w3_ref[...], patch3,
                  preferred_element_type=jnp.float32) + b3_ref[...]
    o_ref[0] = out.astype(o_ref.dtype)


# ----------------------------------------------------------------------------
# Wrapper: PyTorch-layout params (C_out, C_in, K), NCL input.
# ----------------------------------------------------------------------------
def temponet_blocks_forward(x_ncl, torch_params, dilation, stride, *,
                            batch_block=8, compute_dtype=None):
    N, C_in, L = x_ncl.shape
    w1, b1 = torch_params["w1"], torch_params["b1"]
    w2, b2 = torch_params["w2"], torch_params["b2"]
    w3, b3 = torch_params["w3"], torch_params["b3"]
    C1, C_out = w1.shape[0], w3.shape[0]
    K1, K2, K3 = w1.shape[2], w2.shape[2], w3.shape[2]
    pad3 = 2

    P = 2 * stride                       # conv3 stride * pool stride
    assert L % P == 0, "sequence length must be a multiple of 2*stride"
    Lp = L // P                          # pooled length per sample
    # Single source of truth for the output length (correctness concern):
    L_conv = (L + 2 * pad3 - (K3 - 1) - 1) // stride + 1
    L_pool = L_conv // 2
    assert L_pool == Lp and L_conv == 2 * Lp, (L_conv, L_pool, Lp)

    cdtype = jnp.dtype(compute_dtype) if compute_dtype is not None else x_ncl.dtype

    # --- batch packing: NB samples side-by-side along lanes ----------------
    NB = max(1, min(batch_block, N))
    T = -(-N // NB)
    N_pad = T * NB
    if N_pad != N:
        x_ncl = jnp.concatenate(
            [x_ncl, jnp.zeros((N_pad - N, C_in, L), x_ncl.dtype)], axis=0)

    # --- polyphase split + batch packing (free XLA-side layout prep) -------
    # x_packed[t, p, c, n*Lp + j] = x[t*NB + n, c, P*j + p]
    xp = x_ncl.reshape(N_pad, C_in, Lp, P).transpose(0, 3, 1, 2)   # n,p,c,j
    xp = xp.reshape(T, NB, P, C_in, Lp).transpose(0, 2, 3, 1, 4)   # t,p,c,n,j
    x_packed = xp.reshape(T, P, C_in, NB * Lp).astype(cdtype)

    # --- im2col weight slabs, tap-major rows, pre-cast once ----------------
    w1f = jnp.transpose(w1, (0, 2, 1)).reshape(C1, K1 * C_in).astype(cdtype)
    w2f = jnp.transpose(w2, (0, 2, 1)).reshape(C1, K2 * C1).astype(cdtype)
    # conv3 + AvgPool(2,2) folded into one (K3 + stride)-tap effective kernel:
    # pooled[l] = 0.5*(y3[2l] + y3[2l+1]) = sum_j w_eff[j] @ y2[2*s*l + j - pad3]
    J = K3 + stride
    w_eff = jnp.zeros((C_out, C1, J), w3.dtype)
    for j in range(J):
        if j < K3:
            w_eff = w_eff.at[:, :, j].add(0.5 * w3[:, :, j])
        if 0 <= j - stride < K3:
            w_eff = w_eff.at[:, :, j].add(0.5 * w3[:, :, j - stride])
    w3f = jnp.transpose(w_eff, (0, 2, 1)).reshape(C_out, J * C1).astype(cdtype)

    b1c = b1.reshape(C1, 1).astype(jnp.float32)
    b2c = b2.reshape(C1, 1).astype(jnp.float32)
    b3c = b3.reshape(C_out, 1).astype(jnp.float32)

    # Static tap offsets (PyTorch conv semantics: x[n*stride - pad + k*dil]).
    offs12 = tuple(k * dilation - dilation for k in range(K1))
    offs3 = tuple(j - pad3 for j in range(J))

    kern = functools.partial(_temponet_poly_kernel, P=P, Lp=Lp, NB=NB,
                             offs12=offs12, offs3=offs3)

    flops = (2 * N_pad * L * (K1 * C_in * C1 + K2 * C1 * C1)
             + 2 * N_pad * Lp * (J * C1 * C_out))
    bytes_accessed = (x_packed.size * x_packed.dtype.itemsize
                      + sum(int(a.size) * a.dtype.itemsize
                            for a in (w1f, b1c, w2f, b2c, w3f, b3c))
                      + T * C_out * NB * Lp * jnp.dtype(x_ncl.dtype).itemsize)

    out_packed = pl.pallas_call(
        kern,
        out_shape=jax.ShapeDtypeStruct((T, C_out, NB * Lp), x_ncl.dtype),
        grid=(T,),
        in_specs=[
            pl.BlockSpec((1, P, C_in, NB * Lp), lambda t: (t, 0, 0, 0)),
            pl.BlockSpec(w1f.shape, lambda t: (0, 0)),
            pl.BlockSpec(b1c.shape, lambda t: (0, 0)),
            pl.BlockSpec(w2f.shape, lambda t: (0, 0)),
            pl.BlockSpec(b2c.shape, lambda t: (0, 0)),
            pl.BlockSpec(w3f.shape, lambda t: (0, 0)),
            pl.BlockSpec(b3c.shape, lambda t: (0, 0)),
        ],
        out_specs=pl.BlockSpec((1, C_out, NB * Lp), lambda t: (t, 0, 0)),
        compiler_params=pltpu.CompilerParams(
            dimension_semantics=("parallel",)),
        cost_estimate=pl.CostEstimate(flops=flops, transcendentals=0,
                                      bytes_accessed=bytes_accessed),
    )(x_packed, w1f, b1c, w2f, b2c, w3f, b3c)

    # Unpack: (T, C_out, NB*Lp) -> (N, C_out, L_pool)
    out = out_packed.reshape(T, C_out, NB, Lp).transpose(0, 2, 1, 3)
    return out.reshape(N_pad, C_out, Lp)[:N]


# ----------------------------------------------------------------------------
# Pure-JAX reference (mirrors PyTorch Conv1d / AvgPool1d semantics)
# ----------------------------------------------------------------------------
def _ref_conv1d(x_ncl, w_oik, b, stride, dilation, padding):
    y = jax.lax.conv_general_dilated(
        x_ncl, w_oik, window_strides=(stride,), padding=[(padding, padding)],
        rhs_dilation=(dilation,), dimension_numbers=("NCH", "OIH", "NCH"),
        precision=jax.lax.Precision.HIGHEST)
    return y + b[None, :, None]


def _ref_avgpool(x_ncl):
    N, C, L = x_ncl.shape
    Lp = (L // 2) * 2
    return x_ncl[:, :, :Lp].reshape(N, C, Lp // 2, 2).mean(axis=-1)


def _ref_forward(x_ncl, p, dilation, stride):
    x = _ref_conv1d(x_ncl, p["w1"], p["b1"], 1, dilation, dilation)
    x = _ref_conv1d(x, p["w2"], p["b2"], 1, dilation, dilation)
    x = _ref_conv1d(x, p["w3"], p["b3"], stride, 1, 2)
    return _ref_avgpool(x)


if __name__ == "__main__":
    # Module config (TEMPONet block hyper-params at small test sizes).
    dilation, stride = 2, 2
    in_channels, out_channels = 4, 8
    N, L = 2, 16
    c_half = out_channels // 2

    key = jax.random.PRNGKey(0)
    k = jax.random.split(key, 7)
    x = jax.random.normal(k[0], (N, in_channels, L), jnp.float32)

    # PyTorch Conv1d weight layout: (C_out, C_in, K)
    torch_params = {
        "w1": jax.random.normal(k[1], (c_half, in_channels, 3), jnp.float32) * 0.3,
        "b1": jax.random.normal(k[2], (c_half,), jnp.float32) * 0.1,
        "w2": jax.random.normal(k[3], (c_half, c_half, 3), jnp.float32) * 0.3,
        "b2": jax.random.normal(k[4], (c_half,), jnp.float32) * 0.1,
        "w3": jax.random.normal(k[5], (out_channels, c_half, 5), jnp.float32) * 0.3,
        "b3": jax.random.normal(k[6], (out_channels,), jnp.float32) * 0.1,
    }

    out = temponet_blocks_forward(x, torch_params, dilation, stride)
    out = jax.block_until_ready(out)

    ref = _ref_forward(x, torch_params, dilation, stride)
    assert out.shape == ref.shape, (out.shape, ref.shape)
    assert jnp.allclose(out, ref, atol=1e-3, rtol=1e-3), float(
        jnp.max(jnp.abs(out - ref)))

    print("KERNEL_OK")
</pallas_src>

<mosaic_0001>
module attributes {stable_mosaic.version = 11 : i64} {
  func.func @_temponet_poly_kernel(%arg0: i32, %arg1: memref<1x4x4x8xf32, #tpu.memory_space<vmem>>, %arg2: memref<4x12xf32, #tpu.memory_space<vmem>>, %arg3: memref<4x1xf32, #tpu.memory_space<vmem>>, %arg4: memref<4x12xf32, #tpu.memory_space<vmem>>, %arg5: memref<4x1xf32, #tpu.memory_space<vmem>>, %arg6: memref<8x28xf32, #tpu.memory_space<vmem>>, %arg7: memref<8x1xf32, #tpu.memory_space<vmem>>, %arg8: memref<1x8x8xf32, #tpu.memory_space<vmem>>) attributes {dimension_semantics = [#tpu.dimension_semantics<parallel>], iteration_bounds = array<i64: 1>, scalar_prefetch = 0 : i64, scratch_operands = 0 : i64, tpu.core_type = #tpu.core_type<tc>, window_params = [{transform_indices = @transform_0, window_bounds = array<i64: 1, 4, 4, 8>}, {pipeline_mode = #tpu.pipeline_mode<synchronous>, transform_indices = @transform_1, window_bounds = array<i64: 4, 12>}, {pipeline_mode = #tpu.pipeline_mode<synchronous>, transform_indices = @transform_2, window_bounds = array<i64: 4, 1>}, {pipeline_mode = #tpu.pipeline_mode<synchronous>, transform_indices = @transform_3, window_bounds = array<i64: 4, 12>}, {pipeline_mode = #tpu.pipeline_mode<synchronous>, transform_indices = @transform_4, window_bounds = array<i64: 4, 1>}, {pipeline_mode = #tpu.pipeline_mode<synchronous>, transform_indices = @transform_5, window_bounds = array<i64: 8, 28>}, {pipeline_mode = #tpu.pipeline_mode<synchronous>, transform_indices = @transform_6, window_bounds = array<i64: 8, 1>}, {transform_indices = @transform_7, window_bounds = array<i64: 1, 8, 8>}]} {
    %0 = tpu.iota {dimensions = array<i32: 1>} : vector<1x8xi32>
    %c4_i32 = arith.constant 4 : i32
    %c0_i32 = arith.constant 0 : i32
    %1 = arith.cmpi eq, %c4_i32, %c0_i32 : i32
    %c1_i32 = arith.constant 1 : i32
    %2 = arith.select %1, %c1_i32, %c4_i32 : i32
    %3 = vector.broadcast %2 : i32 to vector<1x8xi32>
    %4 = arith.remsi %0, %3 : vector<1x8xi32>
    %c0_i32_0 = arith.constant 0 : i32
    %5 = vector.broadcast %c0_i32_0 : i32 to vector<1x8xi32>
    %6 = arith.cmpi ne, %4, %5 : vector<1x8xi32>
    %c0_i32_1 = arith.constant 0 : i32
    %7 = vector.broadcast %c0_i32_1 : i32 to vector<1x8xi32>
    %8 = arith.cmpi slt, %4, %7 : vector<1x8xi32>
    %c0_i32_2 = arith.constant 0 : i32
    %9 = arith.cmpi slt, %2, %c0_i32_2 : i32
    %10 = vector.broadcast %9 : i1 to vector<1x8xi1>
    %11 = vector.broadcast %10 : vector<1x8xi1> to vector<1x8xi1>
    %12 = arith.xori %8, %11 : vector<1x8xi1>
    %13 = arith.andi %12, %6 : vector<1x8xi1>
    %14 = vector.broadcast %2 : i32 to vector<1x8xi32>
    %15 = arith.addi %4, %14 : vector<1x8xi32>
    %16 = arith.select %13, %15, %4 : vector<1x8xi1>, vector<1x8xi32>
    %c0 = arith.constant 0 : index
    %c0_3 = arith.constant 0 : index
    %c0_4 = arith.constant 0 : index
    %c0_5 = arith.constant 0 : index
    %17 = vector.load %arg1[%c0, %c0_3, %c0_4, %c0_5] : memref<1x4x4x8xf32, #tpu.memory_space<vmem>>, vector<1x1x4x8xf32>
    %18 = vector.shape_cast %17 : vector<1x1x4x8xf32> to vector<4x8xf32>
    %c0_6 = arith.constant 0 : index
    %c1 = arith.constant 1 : index
    %c0_7 = arith.constant 0 : index
    %c0_8 = arith.constant 0 : index
    %19 = vector.load %arg1[%c0_6, %c1, %c0_7, %c0_8] : memref<1x4x4x8xf32, #tpu.memory_space<vmem>>, vector<1x1x4x8xf32>
    %20 = vector.shape_cast %19 : vector<1x1x4x8xf32> to vector<4x8xf32>
    %c0_9 = arith.constant 0 : index
    %c2 = arith.constant 2 : index
    %c0_10 = arith.constant 0 : index
    %c0_11 = arith.constant 0 : index
    %21 = vector.load %arg1[%c0_9, %c2, %c0_10, %c0_11] : memref<1x4x4x8xf32, #tpu.memory_space<vmem>>, vector<1x1x4x8xf32>
    %22 = vector.shape_cast %21 : vector<1x1x4x8xf32> to vector<4x8xf32>
    %c0_12 = arith.constant 0 : index
    %c3 = arith.constant 3 : index
    %c0_13 = arith.constant 0 : index
    %c0_14 = arith.constant 0 : index
    %23 = vector.load %arg1[%c0_12, %c3, %c0_13, %c0_14] : memref<1x4x4x8xf32, #tpu.memory_space<vmem>>, vector<1x1x4x8xf32>
    %24 = vector.shape_cast %23 : vector<1x1x4x8xf32> to vector<4x8xf32>
    %cst = arith.constant 0.000000e+00 : f32
    %25 = vector.broadcast %cst : f32 to vector<4x1xf32>
    %26 = vector.extract_strided_slice %22 {offsets = [0, 0], sizes = [4, 7], strides = [1, 1]} : vector<4x8xf32> to vector<4x7xf32>
    %27 = tpu.concatenate %25, %26 in 1 : vector<4x1xf32>, vector<4x7xf32> -> vector<4x8xf32>
    %c1_i32_15 = arith.constant 1 : i32
    %28 = vector.broadcast %c1_i32_15 : i32 to vector<1x8xi32>
    %29 = arith.cmpi sge, %16, %28 : vector<1x8xi32>
    %30 = arith.extui %29 : vector<1x8xi1> to vector<1x8xi32>
    %31 = arith.sitofp %30 : vector<1x8xi32> to vector<1x8xf32>
    %32 = vector.broadcast %31 : vector<1x8xf32> to vector<4x8xf32>
    %33 = arith.mulf %27, %32 : vector<4x8xf32>
    %34 = tpu.concatenate %33, %18, %22 in 0 : vector<4x8xf32>, vector<4x8xf32>, vector<4x8xf32> -> vector<12x8xf32>
    %cst_16 = arith.constant 0.000000e+00 : f32
    %35 = vector.broadcast %cst_16 : f32 to vector<4x1xf32>
    %36 = vector.extract_strided_slice %24 {offsets = [0, 0], sizes = [4, 7], strides = [1, 1]} : vector<4x8xf32> to vector<4x7xf32>
    %37 = tpu.concatenate %35, %36 in 1 : vector<4x1xf32>, vector<4x7xf32> -> vector<4x8xf32>
    %38 = vector.broadcast %31 : vector<1x8xf32> to vector<4x8xf32>
    %39 = arith.mulf %37, %38 : vector<4x8xf32>
    %40 = tpu.concatenate %39, %20, %24 in 0 : vector<4x8xf32>, vector<4x8xf32>, vector<4x8xf32> -> vector<12x8xf32>
    %41 = vector.extract_strided_slice %18 {offsets = [0, 1], sizes = [4, 7], strides = [1, 1]} : vector<4x8xf32> to vector<4x7xf32>
    %cst_17 = arith.constant 0.000000e+00 : f32
    %42 = vector.broadcast %cst_17 : f32 to vector<4x1xf32>
    %43 = tpu.concatenate %41, %42 in 1 : vector<4x7xf32>, vector<4x1xf32> -> vector<4x8xf32>
    %c3_i32 = arith.constant 3 : i32
    %44 = vector.broadcast %c3_i32 : i32 to vector<1x8xi32>
    %45 = arith.cmpi slt, %16, %44 : vector<1x8xi32>
    %46 = arith.extui %45 : vector<1x8xi1> to vector<1x8xi32>
    %47 = arith.sitofp %46 : vector<1x8xi32> to vector<1x8xf32>
    %48 = vector.broadcast %47 : vector<1x8xf32> to vector<4x8xf32>
    %49 = arith.mulf %43, %48 : vector<4x8xf32>
    %50 = tpu.concatenate %18, %22, %49 in 0 : vector<4x8xf32>, vector<4x8xf32>, vector<4x8xf32> -> vector<12x8xf32>
    %51 = vector.extract_strided_slice %20 {offsets = [0, 1], sizes = [4, 7], strides = [1, 1]} : vector<4x8xf32> to vector<4x7xf32>
    %cst_18 = arith.constant 0.000000e+00 : f32
    %52 = vector.broadcast %cst_18 : f32 to vector<4x1xf32>
    %53 = tpu.concatenate %51, %52 in 1 : vector<4x7xf32>, vector<4x1xf32> -> vector<4x8xf32>
    %54 = vector.broadcast %47 : vector<1x8xf32> to vector<4x8xf32>
    %55 = arith.mulf %53, %54 : vector<4x8xf32>
    %56 = tpu.concatenate %20, %24, %55 in 0 : vector<4x8xf32>, vector<4x8xf32>, vector<4x8xf32> -> vector<12x8xf32>
    %57 = tpu.concatenate %34, %40, %50, %56 in 1 : vector<12x8xf32>, vector<12x8xf32>, vector<12x8xf32>, vector<12x8xf32> -> vector<12x32xf32>
    %c0_19 = arith.constant 0 : index
    %c0_20 = arith.constant 0 : index
    %58 = vector.load %arg2[%c0_19, %c0_20] : memref<4x12xf32, #tpu.memory_space<vmem>>, vector<4x12xf32>
    %cst_21 = arith.constant dense<0.000000e+00> : vector<4x32xf32>
    %59 = tpu.matmul %58, %57, %cst_21 {dimension_numbers = #tpu.dot_dimension_numbers<[1], [0], [0], [1], [0, 0, 1, 1], [], []>} : vector<4x12xf32>, vector<12x32xf32>, vector<4x32xf32> -> vector<4x32xf32>
    %c0_22 = arith.constant 0 : index
    %c0_23 = arith.constant 0 : index
    %60 = vector.load %arg3[%c0_22, %c0_23] : memref<4x1xf32, #tpu.memory_space<vmem>>, vector<4x1xf32>
    %61 = vector.broadcast %60 : vector<4x1xf32> to vector<4x32xf32>
    %62 = arith.addf %59, %61 : vector<4x32xf32>
    %63 = vector.extract_strided_slice %62 {offsets = [0, 16], sizes = [4, 8], strides = [1, 1]} : vector<4x32xf32> to vector<4x8xf32>
    %cst_24 = arith.constant 0.000000e+00 : f32
    %64 = vector.broadcast %cst_24 : f32 to vector<4x1xf32>
    %65 = vector.extract_strided_slice %63 {offsets = [0, 0], sizes = [4, 7], strides = [1, 1]} : vector<4x8xf32> to vector<4x7xf32>
    %66 = tpu.concatenate %64, %65 in 1 : vector<4x1xf32>, vector<4x7xf32> -> vector<4x8xf32>
    %67 = vector.broadcast %31 : vector<1x8xf32> to vector<4x8xf32>
    %68 = arith.mulf %66, %67 : vector<4x8xf32>
    %69 = vector.extract_strided_slice %62 {offsets = [0, 0], sizes = [4, 8], strides = [1, 1]} : vector<4x32xf32> to vector<4x8xf32>
    %70 = vector.extract_strided_slice %62 {offsets = [0, 16], sizes = [4, 8], strides = [1, 1]} : vector<4x32xf32> to vector<4x8xf32>
    %71 = tpu.concatenate %68, %69, %70 in 0 : vector<4x8xf32>, vector<4x8xf32>, vector<4x8xf32> -> vector<12x8xf32>
    %72 = vector.extract_strided_slice %62 {offsets = [0, 24], sizes = [4, 8], strides = [1, 1]} : vector<4x32xf32> to vector<4x8xf32>
    %cst_25 = arith.constant 0.000000e+00 : f32
    %73 = vector.broadcast %cst_25 : f32 to vector<4x1xf32>
    %74 = vector.extract_strided_slice %72 {offsets = [0, 0], sizes = [4, 7], strides = [1, 1]} : vector<4x8xf32> to vector<4x7xf32>
    %75 = tpu.concatenate %73, %74 in 1 : vector<4x1xf32>, vector<4x7xf32> -> vector<4x8xf32>
    %76 = vector.broadcast %31 : vector<1x8xf32> to vector<4x8xf32>
    %77 = arith.mulf %75, %76 : vector<4x8xf32>
    %78 = vector.extract_strided_slice %62 {offsets = [0, 8], sizes = [4, 8], strides = [1, 1]} : vector<4x32xf32> to vector<4x8xf32>
    %79 = vector.extract_strided_slice %62 {offsets = [0, 24], sizes = [4, 8], strides = [1, 1]} : vector<4x32xf32> to vector<4x8xf32>
    %80 = tpu.concatenate %77, %78, %79 in 0 : vector<4x8xf32>, vector<4x8xf32>, vector<4x8xf32> -> vector<12x8xf32>
    %81 = vector.extract_strided_slice %62 {offsets = [0, 0], sizes = [4, 8], strides = [1, 1]} : vector<4x32xf32> to vector<4x8xf32>
    %82 = vector.extract_strided_slice %81 {offsets = [0, 1], sizes = [4, 7], strides = [1, 1]} : vector<4x8xf32> to vector<4x7xf32>
    %cst_26 = arith.constant 0.000000e+00 : f32
    %83 = vector.broadcast %cst_26 : f32 to vector<4x1xf32>
    %84 = tpu.concatenate %82, %83 in 1 : vector<4x7xf32>, vector<4x1xf32> -> vector<4x8xf32>
    %85 = vector.broadcast %47 : vector<1x8xf32> to vector<4x8xf32>
    %86 = arith.mulf %84, %85 : vector<4x8xf32>
    %87 = tpu.concatenate %69, %70, %86 in 0 : vector<4x8xf32>, vector<4x8xf32>, vector<4x8xf32> -> vector<12x8xf32>
    %88 = vector.extract_strided_slice %62 {offsets = [0, 8], sizes = [4, 8], strides = [1, 1]} : vector<4x32xf32> to vector<4x8xf32>
    %89 = vector.extract_strided_slice %88 {offsets = [0, 1], sizes = [4, 7], strides = [1, 1]} : vector<4x8xf32> to vector<4x7xf32>
    %cst_27 = arith.constant 0.000000e+00 : f32
    %90 = vector.broadcast %cst_27 : f32 to vector<4x1xf32>
    %91 = tpu.concatenate %89, %90 in 1 : vector<4x7xf32>, vector<4x1xf32> -> vector<4x8xf32>
    %92 = vector.broadcast %47 : vector<1x8xf32> to vector<4x8xf32>
    %93 = arith.mulf %91, %92 : vector<4x8xf32>
    %94 = tpu.concatenate %78, %79, %93 in 0 : vector<4x8xf32>, vector<4x8xf32>, vector<4x8xf32> -> vector<12x8xf32>
    %95 = tpu.concatenate %71, %80, %87, %94 in 1 : vector<12x8xf32>, vector<12x8xf32>, vector<12x8xf32>, vector<12x8xf32> -> vector<12x32xf32>
    %c0_28 = arith.constant 0 : index
    %c0_29 = arith.constant 0 : index
    %96 = vector.load %arg4[%c0_28, %c0_29] : memref<4x12xf32, #tpu.memory_space<vmem>>, vector<4x12xf32>
    %cst_30 = arith.constant dense<0.000000e+00> : vector<4x32xf32>
    %97 = tpu.matmul %96, %95, %cst_30 {dimension_numbers = #tpu.dot_dimension_numbers<[1], [0], [0], [1], [0, 0, 1, 1], [], []>} : vector<4x12xf32>, vector<12x32xf32>, vector<4x32xf32> -> vector<4x32xf32>
    %c0_31 = arith.constant 0 : index
    %c0_32 = arith.constant 0 : index
    %98 = vector.load %arg5[%c0_31, %c0_32] : memref<4x1xf32, #tpu.memory_space<vmem>>, vector<4x1xf32>
    %99 = vector.broadcast %98 : vector<4x1xf32> to vector<4x32xf32>
    %100 = arith.addf %97, %99 : vector<4x32xf32>
    %101 = vector.extract_strided_slice %100 {offsets = [0, 16], sizes = [4, 8], strides = [1, 1]} : vector<4x32xf32> to vector<4x8xf32>
    %cst_33 = arith.constant 0.000000e+00 : f32
    %102 = vector.broadcast %cst_33 : f32 to vector<4x1xf32>
    %103 = vector.extract_strided_slice %101 {offsets = [0, 0], sizes = [4, 7], strides = [1, 1]} : vector<4x8xf32> to vector<4x7xf32>
    %104 = tpu.concatenate %102, %103 in 1 : vector<4x1xf32>, vector<4x7xf32> -> vector<4x8xf32>
    %105 = vector.broadcast %31 : vector<1x8xf32> to vector<4x8xf32>
    %106 = arith.mulf %104, %105 : vector<4x8xf32>
    %107 = vector.extract_strided_slice %100 {offsets = [0, 24], sizes = [4, 8], strides = [1, 1]} : vector<4x32xf32> to vector<4x8xf32>
    %cst_34 = arith.constant 0.000000e+00 : f32
    %108 = vector.broadcast %cst_34 : f32 to vector<4x1xf32>
    %109 = vector.extract_strided_slice %107 {offsets = [0, 0], sizes = [4, 7], strides = [1, 1]} : vector<4x8xf32> to vector<4x7xf32>
    %110 = tpu.concatenate %108, %109 in 1 : vector<4x1xf32>, vector<4x7xf32> -> vector<4x8xf32>
    %111 = vector.broadcast %31 : vector<1x8xf32> to vector<4x8xf32>
    %112 = arith.mulf %110, %111 : vector<4x8xf32>
    %113 = vector.extract_strided_slice %100 {offsets = [0, 0], sizes = [4, 8], strides = [1, 1]} : vector<4x32xf32> to vector<4x8xf32>
    %114 = vector.extract_strided_slice %100 {offsets = [0, 8], sizes = [4, 8], strides = [1, 1]} : vector<4x32xf32> to vector<4x8xf32>
    %115 = vector.extract_strided_slice %100 {offsets = [0, 16], sizes = [4, 8], strides = [1, 1]} : vector<4x32xf32> to vector<4x8xf32>
    %116 = vector.extract_strided_slice %100 {offsets = [0, 24], sizes = [4, 8], strides = [1, 1]} : vector<4x32xf32> to vector<4x8xf32>
    %117 = vector.extract_strided_slice %100 {offsets = [0, 0], sizes = [4, 8], strides = [1, 1]} : vector<4x32xf32> to vector<4x8xf32>
    %118 = vector.extract_strided_slice %117 {offsets = [0, 1], sizes = [4, 7], strides = [1, 1]} : vector<4x8xf32> to vector<4x7xf32>
    %cst_35 = arith.constant 0.000000e+00 : f32
    %119 = vector.broadcast %cst_35 : f32 to vector<4x1xf32>
    %120 = tpu.concatenate %118, %119 in 1 : vector<4x7xf32>, vector<4x1xf32> -> vector<4x8xf32>
    %121 = vector.broadcast %47 : vector<1x8xf32> to vector<4x8xf32>
    %122 = arith.mulf %120, %121 : vector<4x8xf32>
    %123 = tpu.concatenate %106, %112, %113, %114, %115, %116, %122 in 0 : vector<4x8xf32>, vector<4x8xf32>, vector<4x8xf32>, vector<4x8xf32>, vector<4x8xf32>, vector<4x8xf32>, vector<4x8xf32> -> vector<28x8xf32>
    %c0_36 = arith.constant 0 : index
    %c0_37 = arith.constant 0 : index
    %124 = vector.load %arg6[%c0_36, %c0_37] : memref<8x28xf32, #tpu.memory_space<vmem>>, vector<8x28xf32>
    %cst_38 = arith.constant dense<0.000000e+00> : vector<8x8xf32>
    %125 = tpu.matmul %124, %123, %cst_38 {dimension_numbers = #tpu.dot_dimension_numbers<[1], [0], [0], [1], [0, 0, 1, 1], [], []>} : vector<8x28xf32>, vector<28x8xf32>, vector<8x8xf32> -> vector<8x8xf32>
    %c0_39 = arith.constant 0 : index
    %c0_40 = arith.constant 0 : index
    %126 = vector.load %arg7[%c0_39, %c0_40] : memref<8x1xf32, #tpu.memory_space<vmem>>, vector<8x1xf32>
    %127 = vector.broadcast %126 : vector<8x1xf32> to vector<8x8xf32>
    %128 = arith.addf %125, %127 : vector<8x8xf32>
    %c0_41 = arith.constant 0 : index
    %c0_42 = arith.constant 0 : index
    %c0_43 = arith.constant 0 : index
    %129 = vector.load %arg8[%c0_41, %c0_42, %c0_43] : memref<1x8x8xf32, #tpu.memory_space<vmem>>, vector<1x8x8xf32>
    %130 = vector.shape_cast %129 : vector<1x8x8xf32> to vector<8x8xf32>
    %131 = vector.shape_cast %128 : vector<8x8xf32> to vector<1x8x8xf32>
    tpu.vector_store %arg8[%c0_41, %c0_42, %c0_43], %131 {strides = array<i32>} : memref<1x8x8xf32, #tpu.memory_space<vmem>>, vector<1x8x8xf32>,
    return
  }
  func.func @transform_0(%arg0: i32) -> (i32, i32, i32, i32) {
    %c0_i32 = arith.constant 0 : i32
    %c0_i32_0 = arith.constant 0 : i32
    %c0_i32_1 = arith.constant 0 : i32
    %c0_i32_2 = arith.constant 0 : i32
    return %arg0, %c0_i32, %c0_i32_0, %c0_i32_1 : i32, i32, i32, i32
  }
  func.func @transform_1(%arg0: i32) -> (i32, i32) {
    %c0_i32 = arith.constant 0 : i32
    %c0_i32_0 = arith.constant 0 : i32
    %c0_i32_1 = arith.constant 0 : i32
    return %c0_i32, %c0_i32_0 : i32, i32
  }
  func.func @transform_2(%arg0: i32) -> (i32, i32) {
    %c0_i32 = arith.constant 0 : i32
    %c0_i32_0 = arith.constant 0 : i32
    %c0_i32_1 = arith.constant 0 : i32
    return %c0_i32, %c0_i32_0 : i32, i32
  }
  func.func @transform_3(%arg0: i32) -> (i32, i32) {
    %c0_i32 = arith.constant 0 : i32
    %c0_i32_0 = arith.constant 0 : i32
    %c0_i32_1 = arith.constant 0 : i32
    return %c0_i32, %c0_i32_0 : i32, i32
  }
  func.func @transform_4(%arg0: i32) -> (i32, i32) {
    %c0_i32 = arith.constant 0 : i32
    %c0_i32_0 = arith.constant 0 : i32
    %c0_i32_1 = arith.constant 0 : i32
    return %c0_i32, %c0_i32_0 : i32, i32
  }
  func.func @transform_5(%arg0: i32) -> (i32, i32) {
    %c0_i32 = arith.constant 0 : i32
    %c0_i32_0 = arith.constant 0 : i32
    %c0_i32_1 = arith.constant 0 : i32
    return %c0_i32, %c0_i32_0 : i32, i32
  }
  func.func @transform_6(%arg0: i32) -> (i32, i32) {
    %c0_i32 = arith.constant 0 : i32
    %c0_i32_0 = arith.constant 0 : i32
    %c0_i32_1 = arith.constant 0 : i32
    return %c0_i32, %c0_i32_0 : i32, i32
  }
  func.func @transform_7(%arg0: i32) -> (i32, i32, i32) {
    %c0_i32 = arith.constant 0 : i32
    %c0_i32_0 = arith.constant 0 : i32
    %c0_i32_1 = arith.constant 0 : i32
    return %arg0, %c0_i32, %c0_i32_0 : i32, i32, i32
  }
}

</mosaic_0001>

<bundles_post_ra>
// kernel: tpu_custom_call.1
= control target key start
LH: loop header
LB: loop body
LE: loop exit
PB: predicated region body
PF: predicated region fallthrough
CT: control target
= control target key end

     0   :  { %12 = vsyncpa [#allocation3], 0  ;;  %s830_s0 = inlined_call_operand.vmem [shape: f32[1,4,4,8], index: 0, kind: input, shape index: {}]   ;;  %s831_s1 = inlined_call_operand.hbm [shape: f32[4,12], index: 1, kind: input, shape index: {}]   ;;  %s832_s2 = inlined_call_operand.vmem [shape: f32[4,1], index: 2, kind: input, shape index: {}]   ;;  %s833_s3 = inlined_call_operand.hbm [shape: f32[4,12], index: 3, kind: input, shape index: {}]   ;;  %s834_s4 = inlined_call_operand.vmem [shape: f32[4,1], index: 4, kind: input, shape index: {}]   ;;  %s835_s5 = inlined_call_operand.vmem [shape: f32[8,28], index: 5, kind: input, shape index: {}]   ;;  %s836_s6 = inlined_call_operand.vmem [shape: f32[8,1], index: 6, kind: input, shape index: {}]   ;;  %s837_s7 = inlined_call_operand.hbm [shape: f32[1,8,8], index: 7, kind: output, shape index: {}]  }
   0x1   :  { %13 = vsyncpa [#allocation6], 0 }
   0x2   :  { %14 = vsyncpa [#allocation4], 0  ;;  %s645_s24 = smov [#allocation2]   ;;  %s646_s26 = smov [#allocation5]  }
   0x3   :  { %s23_s25 = sshll.u32 %s645_s24, 4  ;;  %s35_s27 = sshll.u32 %s646_s26, 4  ;;  %s24_s25 = int_to_ptr.vmem [resolvable:$true] %s23_s25  ;;  %s36_s27 = int_to_ptr.vmem [resolvable:$true] %s35_s27 }
   0x4   :  { %s587_s28 = scalar_lea.vmem %s24_s25, 64  ;;  %p592_p1 = scmp.lt.s32.totalorder %s24_s25, %s24_s25 }
   0x5   :  { %p588_p0 = scmp.ne.s32.totalorder %s24_s25, %s587_s28  ;;  %p593_p2 = scmp.lt.s32.totalorder %s587_s28, %s587_s28 }
   0x7   :  { %p594_p3 = por %p593_p2, %p592_p1 }
   0x9   :  { %p595_p4 = pnand %p594_p3, %p588_p0 }
   0xb   :  { %598 = shalt.err (!%p595_p4)
}
   0xc   :  { %26 = dma.hbm_to_vmem [thread:$0]  %s831_s1, 64, %s24_s25, [#allocation3]  }
   0xd   :  { %s607_s8 = scalar_lea.vmem %s36_s27, 64  ;;  %p612_p6 = scmp.lt.s32.totalorder %s36_s27, %s36_s27 }
   0xe   :  { %p608_p5 = scmp.ne.s32.totalorder %s36_s27, %s607_s8  ;;  %p613_p7 = scmp.lt.s32.totalorder %s607_s8, %s607_s8 }
  0x10   :  { %p614_p8 = por %p613_p7, %p612_p6 }
  0x12   :  { %p615_p9 = pnand %p614_p8, %p608_p5 }
  0x14   :  { %618 = shalt.err (!%p615_p9)
}
  0x15   :  { %38 = dma.hbm_to_vmem [thread:$0]  %s833_s3, 64, %s36_s27, [#allocation6]  }
  0x16   :  { %639 = dma.done.wait [#allocation3], 64  }
  0x17   :  { %640 = vsyncadd [#allocation3], 4294967232 }
  0x18   :  { %641 = dma.done.wait [#allocation6], 64  }
  0x19   :  { %642 = vsyncadd [#allocation6], 4294967232  ;;  %v647_v0 = vmov 0.0   ;;  %v515_v1 = vld [vmem:[%s830_s0 + $0xc] sm:$0xf]  ;;  %s648_s14 = smov 1   ;;  %v51_v7 = vlaneseq }
  0x1a   :  { %535 = vmatprep.subr.mxu1 %v647_v0  ;;  %549 = vmatprep.subr.mxu0 %v647_v0  ;;  %v513_v2 = vld [vmem:[%s830_s0 + $0x4] sm:$0xf]  ;;  %v114_v3 = vrot.slane %v515_v1, 4  ;;  %s649_s3 = smov 127   ;;  %v65_v4 = vld [vmem:[%s830_s0] sm:$0xf] }
  0x1b   :  { %88 = vrot.lane.b32.xlu0 %v515_v1, %s648_s14  ;;  %109 = vrot.lane.b32.xlu1 %v513_v2, %s649_s3  ;;  %v514_v5 = vld [vmem:[%s830_s0 + $0x8] sm:$0xf]  ;;  %vm85_vm0 = vcmask 1043456   ;;  %s650_s19 = smov 8   ;;  %v52_v8 = vand.u32 127, %v51_v7  ;;  %vm76_vm2 = vcmask 7168  }
  0x1c   :  { %v116_v6 = vsel %vm85_vm0, %v513_v2, %v114_v3  ;;  %v94_v11 = vrot.slane %v513_v2, 4  ;;  %v106_v15 = vrot.slane %v514_v5, 4  ;;  %vm100_vm4 = vcmask 56320   ;;  %s653_s0 = smov 16   ;;  %v150_v26 = vld [vmem:[%s832_s2] sm:$0xf] }
  0x1d   :  { %v57_v9 = vand.u32 3, %v52_v8  ;;  %vm651_vm5 = vmmov 0   ;;  %v652_v24 = vmov 0   ;;  %s654_s22 = smov 24   ;;  %v83_v31 = vrot.slane %v65_v4, 4  ;;  %s655_s2 = smov 119  }
  0x1e   :  { %539 = vmatprep.mubr.msk.f32.mxu1 %vm651_vm5, %v647_v0  ;;  %557 = vmatprep.mubr.msk.f32.mxu0 %vm651_vm5, %v647_v0  ;;  %v108_v23 = vsel %vm85_vm0, %v65_v4, %v106_v15  ;;  %vm140_vm6 = vcmask 64512   ;;  %vm143_vm7 = vcmask 130048   ;;  %vm146_vm8 = vcmask 195584   ;;  %v149_v43 = vld [vmem:[#allocation2] sm:$0xf]  ;;  %s656_s23 = smov 105  }
  0x1f   :  { %97 = vrot.lane.b32.xlu0 %v65_v4, %s649_s3  ;;  %73 = vrot.lane.b32.xlu1 %v514_v5, %s648_s14  ;;  %vm78_vm1 = vcmp.ge.s32.totalorder %v57_v9, 1  ;;  %vm102_vm3 = vcmp.lt.s32.totalorder %v57_v9, 3  ;;  %vm156_vm9 = vcmask 97280   ;;  %s657_s24 = smov 120   ;;  %s658_s25 = smov 104   ;;  %vm419_vm10 = vcmask 228352  }
  0x20   :  { %v727_v10 = vsel %vm78_vm1, 1.0, %v647_v0  ;;  %v732_v17 = vsel %vm102_vm3, 1.0, %v647_v0  ;;  %577 = vset.pattern.permute.xlu0 %v652_v24  ;;  %578 = vset.pattern.permute.xlu1 %v652_v24  ;;  %s659_s26 = smov 112   ;;  %s660_s27 = smov 113   ;;  %v298_v2 = vld [vmem:[%s834_s4] sm:$0xf] }
  0x21   :  { %s661_s9 = smov [#allocation7]  }
  0x22   :  { %s503_s10 = sshll.u32 %s661_s9, 4  ;;  %s504_s10 = int_to_ptr.vmem [resolvable:$true] %s503_s10 }
  0x23   :  { %120 = vrot.lane.b32.xlu0 %v515_v1, %s650_s19  ;;  %s619_s1 = scalar_lea.vmem %s504_s10, 128  ;;  %p624_p11 = scmp.lt.s32.totalorder %s504_s10, %s504_s10 }
  0x24   :  { %p620_p10 = scmp.ne.s32.totalorder %s504_s10, %s619_s1  ;;  %p625_p12 = scmp.lt.s32.totalorder %s619_s1, %s619_s1 }
  0x26   :  { %p626_p13 = por %p625_p12, %p624_p11 }
  0x28   :  { %p627_p0 = pnand %p626_p13, %p620_p10 }
  0x8d   :  { %v89_v12 = vpop.permute.xlu0 %88  ;;  %v110_v16 = vpop.permute.xlu1 %109 }
  0x8e   :  { %v91_v13 = vsel %vm76_vm2, 0.0, %v89_v12  ;;  %v112_v21 = vsel %vm100_vm4, %v110_v16, 0.0 }
  0x8f   :  { %v92_v14 = vmul.f32 %v727_v10, %v91_v13  ;;  %v113_v25 = vmul.f32 %v732_v17, %v112_v21 }
  0x91   :  { %v98_v18 = vpop.permute.xlu0 %97  ;;  %v96_v19 = vsel %vm85_vm0, %v92_v14, %v94_v11  ;;  %v74_v28 = vpop.permute.xlu1 %73 }
  0x92   :  { %v101_v20 = vsel %vm100_vm4, %v98_v18, 0.0  ;;  %118 = vrot.lane.b32.xlu0 %v96_v19, %s650_s19  ;;  %v77_v29 = vsel %vm76_vm2, 0.0, %v74_v28 }
  0x93   :  { %v105_v22 = vmul.f32 %v732_v17, %v101_v20  ;;  %v81_v32 = vmul.f32 %v727_v10, %v77_v29  ;;  %v297_v20 = vld [vmem:[#allocation5] sm:$0xf] }
  0x95   :  { %128 = vrot.lane.b32.xlu1 %v105_v22, %s653_s0  ;;  %v121_v27 = vpop.permute.xlu0 %120  ;;  %v86_v35 = vsel %vm85_vm0, %v81_v32, %v83_v31 }
  0x96   :  { %126 = vrot.lane.b32.xlu0 %v108_v23, %s653_s0  ;;  %v142_v34 = vsel %vm140_vm6, %v514_v5, %v121_v27  ;;  %v413_v27 = vld [vmem:[%s836_s6] sm:$0xff] }
  0x99   :  { %136 = vrot.lane.b32.xlu1 %v113_v25, %s654_s22 }
  0x9a   :  { %153 = vperm.xlu0 %577, %v150_v26  }
  0x9d   :  { %134 = vrot.lane.b32.xlu1 %v116_v6, %s654_s22 }
 0x104   :  { %v119_v30 = vpop.permute.xlu0 %118 }
 0x105   :  { %v141_v40 = vsel %vm140_vm6, %v86_v35, %v119_v30 }
 0x107   :  { %v129_v33 = vpop.permute.xlu1 %128 }
 0x108   :  { %v145_v36 = vsel %vm143_vm7, %v142_v34, %v129_v33  ;;  %v127_v38 = vpop.permute.xlu0 %126 }
 0x109   :  { %v144_v41 = vsel %vm143_vm7, %v141_v40, %v127_v38 }
 0x10b   :  { %v137_v37 = vpop.permute.xlu1 %136 }
 0x10c   :  { %v148_v39 = vsel %vm146_vm8, %v145_v36, %v137_v37 }
 0x10d   :  { %536 = vmatpush3.msk.msra.mxu1 %vm85_vm0, %v148_v39 }
 0x10e   :  { %537 = vmatprep.subr.mxu1 %v647_v0 }
 0x10f   :  { %v135_v42 = vpop.permute.xlu1 %134 }
 0x110   :  { %v147_v44 = vsel %vm146_vm8, %v144_v41, %v135_v42  ;;  %v412_v42 = vld [vmem:[%s835_s5] sm:$0xff] }
 0x111   :  { %538 = vmatpush3.msra.mxu1 %v147_v44 }
 0x112   :  { %540 = vmatmul.mubr.msk.f32.vlgmr.msra.gmra.mxu1 %vm156_vm9, %v149_v43  ;;  %542 = vmatprep.subr.mxu1 %v647_v0 }
 0x113   :  { %546 = vmatprep.mubr.msk.f32.mxu1 %vm651_vm5, %v647_v0 }
 0x115   :  { %v154_v45 = vpop.permute.xlu0 %153 }
 0x1d2   :  { %v229_v46 = vpop.f32.mrf.mxu1 }
 0x1d3   :  { %v230_v47 = vadd.f32 %v229_v46, %v154_v45 }
 0x1d4   :  { %v541_v48 = vpop.f32.mrf.mxu1 }
 0x1d5   :  { %256 = vrot.lane.b32.xlu0 %v230_v47, %s649_s3  ;;  %265 = vrot.lane.b32.xlu1 %v230_v47, %s655_s2  ;;  %v239_v49 = vrot.slane %v230_v47, 4 }
 0x1d9   :  { %245 = vrot.lane.b32.xlu1 %v230_v47, %s656_s23  ;;  %250 = vrot.lane.b32.xlu0 %v239_v49, %s657_s24 }
 0x1dd   :  { %253 = vrot.lane.b32.xlu1 %v230_v47, %s658_s25 }
 0x1e1   :  { %261 = vrot.lane.b32.xlu1 %v239_v49, %s659_s26 }
 0x1e5   :  { %234 = vrot.lane.b32.xlu1 %v230_v47, %s660_s27 }
 0x247   :  { %v266_v50 = vpop.permute.xlu1 %265  ;;  %v257_v53 = vpop.permute.xlu0 %256 }
 0x248   :  { %v268_v51 = vsel %vm100_vm4, %v266_v50, 0.0  ;;  %v259_v56 = vsel %vm100_vm4, %v257_v53, 0.0 }
 0x249   :  { %v269_v52 = vmul.f32 %v732_v17, %v268_v51  ;;  %v260_v59 = vmul.f32 %v732_v17, %v259_v56 }
 0x24b   :  { %v246_v54 = vpop.permute.xlu1 %245  ;;  %271 = vrot.lane.b32.xlu0 %v269_v52, %s650_s19  ;;  %v251_v60 = vpop.permute.xlu0 %250 }
 0x24c   :  { %v248_v55 = vsel %vm76_vm2, 0.0, %v246_v54 }
 0x24d   :  { %v249_v57 = vmul.f32 %v727_v10, %v248_v55 }
 0x24f   :  { %v254_v58 = vpop.permute.xlu1 %253  ;;  %241 = vrot.lane.b32.xlu0 %v230_v47, %s659_s26  ;;  %v255_v61 = vsel %vm85_vm0, %v249_v57, %v251_v60 }
 0x250   :  { %276 = vrot.lane.b32.xlu1 %v254_v58, %s650_s19 }
 0x253   :  { %284 = vrot.lane.b32.xlu0 %v260_v59, %s653_s0  ;;  %v262_v62 = vpop.permute.xlu1 %261 }
 0x254   :  { %274 = vrot.lane.b32.xlu1 %v255_v61, %s650_s19  ;;  %v264_v63 = vsel %vm85_vm0, %v230_v47, %v262_v62 }
 0x257   :  { %v235_v3 = vpop.permute.xlu1 %234 }
 0x258   :  { %282 = vrot.lane.b32.xlu1 %v264_v63, %s653_s0  ;;  %v237_v6 = vsel %vm76_vm2, 0.0, %v235_v3 }
 0x259   :  { %v238_v8 = vmul.f32 %v727_v10, %v237_v6 }
 0x25b   :  { %v244_v12 = vsel %vm85_vm0, %v238_v8, %v239_v49 }
 0x2bd   :  { %v272_v1 = vpop.permute.xlu0 %271 }
 0x2be   :  { %288 = vrot.lane.b32.xlu0 %v272_v1, %s653_s0 }
 0x2c1   :  { %v242_v5 = vpop.permute.xlu0 %241 }
 0x2c2   :  { %301 = vperm.xlu0 %577, %v298_v2   ;;  %v277_v4 = vpop.permute.xlu1 %276 }
 0x2c3   :  { %v292_v13 = vsel %vm140_vm6, %v242_v5, %v277_v4 }
 0x2c5   :  { %v285_v9 = vpop.permute.xlu0 %284 }
 0x2c6   :  { %v275_v7 = vpop.permute.xlu1 %274  ;;  %v294_v15 = vsel %vm143_vm7, %v292_v13, %v285_v9 }
 0x2c7   :  { %v291_v14 = vsel %vm140_vm6, %v244_v12, %v275_v7 }
 0x2ca   :  { %v283_v11 = vpop.permute.xlu1 %282 }
 0x2cb   :  { %v293_v16 = vsel %vm143_vm7, %v291_v14, %v283_v11 }
 0x2cc   :  { %v295_v21 = vsel %vm146_vm8, %v293_v16, %v283_v11 }
 0x330   :  { %v289_v18 = vpop.permute.xlu0 %288 }
 0x331   :  { %v296_v19 = vsel %vm146_vm8, %v294_v15, %v289_v18 }
 0x332   :  { %543 = vmatpush3.msk.msra.mxu1 %vm85_vm0, %v296_v19 }
 0x333   :  { %544 = vmatprep.subr.mxu1 %v647_v0 }
 0x334   :  { %545 = vmatpush3.msra.mxu1 %v295_v21 }
 0x335   :  { %547 = vmatmul.mubr.msk.f32.vlgmr.msra.gmra.mxu1 %vm156_vm9, %v297_v20 }
 0x33d   :  { %v302_v22 = vpop.permute.xlu0 %301 }
 0x3f5   :  { %v376_v23 = vpop.f32.mrf.mxu1 }
 0x3f6   :  { %v377_v24 = vadd.f32 %v376_v23, %v302_v22 }
 0x3f7   :  { %v548_v25 = vpop.f32.mrf.mxu1 }
 0x3f8   :  { %386 = vrot.lane.b32.xlu0 %v377_v24, %s656_s23  ;;  %391 = vrot.lane.b32.xlu1 %v377_v24, %s649_s3  ;;  %v399_v26 = vrot.slane %v377_v24, 4 }
 0x3fc   :  { %403 = vrot.lane.b32.xlu1 %v377_v24, %s659_s26  ;;  %406 = vrot.lane.b32.xlu0 %v399_v26, %s658_s25 }
 0x400   :  { %381 = vrot.lane.b32.xlu1 %v377_v24, %s660_s27  ;;  %400 = vrot.lane.b32.xlu0 %v399_v26, %s657_s24 }
 0x404   :  { %416 = vperm.xlu1 %578, %v413_v27  }
 0x46a   :  { %v387_v28 = vpop.permute.xlu0 %386  ;;  %v392_v29 = vpop.permute.xlu1 %391 }
 0x46b   :  { %v394_v30 = vsel %vm100_vm4, %v392_v29, 0.0  ;;  %v389_v32 = vsel %vm76_vm2, 0.0, %v387_v28 }
 0x46c   :  { %v395_v31 = vmul.f32 %v732_v17, %v394_v30  ;;  %v390_v36 = vmul.f32 %v727_v10, %v389_v32 }
 0x46e   :  { %550 = vmatpush3.msk.msra.mxu0 %vm85_vm0, %v395_v31  ;;  %v404_v33 = vpop.permute.xlu1 %403  ;;  %v407_v34 = vpop.permute.xlu0 %406  ;;  %v397_v40 = vrot.slane %v390_v36, 4 }
 0x46f   :  { %551 = vmatprep.subr.mxu0 %v647_v0  ;;  %v411_v35 = vsel %vm85_vm0, %v404_v33, %v407_v34 }
 0x470   :  { %552 = vmatpush3.msra.mxu0 %v411_v35 }
 0x471   :  { %553 = vmatprep.subr.mxu0 %v647_v0 }
 0x472   :  { %v382_v37 = vpop.permute.xlu1 %381  ;;  %v401_v38 = vpop.permute.xlu0 %400 }
 0x473   :  { %v384_v39 = vsel %vm76_vm2, 0.0, %v382_v37  ;;  %v410_v17 = vsel %vm85_vm0, %v377_v24, %v401_v38 }
 0x474   :  { %v385_v41 = vmul.f32 %v727_v10, %v384_v39  ;;  %554 = vmatpush3.msra.mxu0 %v410_v17 }
 0x475   :  { %555 = vmatprep.subr.mxu0 %v647_v0 }
 0x476   :  { %v409_v43 = vsel %vm85_vm0, %v385_v41, %v397_v40 }
 0x477   :  { %556 = vmatpush3.msra.mxu0 %v409_v43 }
 0x478   :  { %558 = vmatmul.mubr.msk.f32.vlgmr.msra.gmra.mxu0 %vm419_vm10, %v412_v42 }
 0x47f   :  { %v417_v44 = vpop.permute.xlu1 %416 }
 0x538   :  { %v492_v45 = vpop.f32.mrf.mxu0 }
 0x539   :  { %v493_v46 = vadd.f32 %v492_v45, %v417_v44 }
 0x53a   :  { %v559_v47 = vpop.f32.mrf.mxu0 }
 0x53b   :  { %496 = vst.msk [vmem:[#allocation7] sm:$0xff] %vm140_vm6, %v493_v46 }
 0x53c   :  { %630 = shalt.err (!%p627_p0)
}
 0x53d   :  { %506 = dma.vmem_to_hbm [thread:$0]  %s504_s10, 128, %s837_s7, [#allocation4]  }
 0x53e   :  { %643 = dma.done.wait [#allocation4], 128  }
 0x53f   :  { %644 = vsyncadd [#allocation4], 4294967168 }
 0x540   :  { %510 = vsyncpa [#allocation3], 1 }
 0x541   :  { %511 = vsyncpa [#allocation6], 1 }
 0x542   :  { %512 = vsyncpa [#allocation4], 1 }

</bundles_post_ra>
